<compile_context>
chip_gen: v7x
topology: tpu7x:2x2x1
jax: 0.10.0
libtpu: 0.0.40
codegen_flags: <defaults>
</compile_context>

<pallas_src>
import functools

import jax
import jax.numpy as jnp
from jax.experimental import pallas as pl
from jax.experimental.pallas import tpu as pltpu


_BLOCK_BUDGET_BYTES = 4 * 1024 * 1024     # per-block target
_VMEM_LIMIT_BYTES = 48 * 1024 * 1024      # scoped VMEM limit for both passes


def _round_down(x, m):
    return (x // m) * m


def _pick_tiles(N, C, HW, itemsize, budget_bytes=_BLOCK_BUDGET_BYTES):
    """Block shape (n_blk, c_tile, hw_tile) obeying the (8, 128) rule.

    hw_tile / c_tile need NOT divide HW / C: the grids use pl.cdiv and the
    stats kernel masks the H*W tail, so non-power-of-two spatial sizes still
    get large lane-dense tiles.  n_blk is a divisor of N (batch sizes are
    small) so the batch axis never needs masking.  Every branch respects the
    VMEM budget, so no fallback can blow the scoped-VMEM limit.
    """
    # Lane (last) axis: multiple of 128, or the full extent when HW < 128.
    if HW >= 128:
        cap = max(128, _round_down(budget_bytes // (8 * itemsize), 128))
        hw_tile = min(_round_down(HW, 128), cap, 4096)
    else:
        hw_tile = HW
    # Sublane axis: multiple of 8, or the full extent when C < 8.
    if C >= 8:
        cap = max(8, _round_down(budget_bytes // (hw_tile * itemsize), 8))
        c_tile = min(_round_down(C, 8), cap)
    else:
        c_tile = C
    # Batch axis: largest divisor of N whose block still fits the budget
    # (amortizes per-grid-step overhead for small-feature-map layers).
    per_n = max(1, c_tile * hw_tile * itemsize)
    n_blk = 1
    for cand in range(min(N, max(1, budget_bytes // per_n)), 0, -1):
        if N % cand == 0:
            n_blk = cand
            break
    return n_blk, c_tile, hw_tile


# ---------------------------------------------------------------------------
# Pass 1: per-channel sum and sum-of-squares (fp32 accumulation).
# Grid = (split, C_blocks, N_blocks, HW_blocks_per_split); the sum/sumsq
# output blocks are indexed by (split, channel-block) only, so they stay
# resident in VMEM across the batch / HW reduction axes.
# ---------------------------------------------------------------------------
def _bn_stats_kernel(x_ref, sum_ref, sumsq_ref, *,
                     HW, hw_tile, n_hw_inner, mask_tail):
    n = pl.program_id(2)
    hw = pl.program_id(3)

    x = x_ref[...].astype(jnp.float32)              # (n_blk, c_tile, hw_tile)

    if mask_tail:
        # Zero the lanes past the true H*W extent (cdiv tail block).
        s = pl.program_id(0)
        hw_start = (s * n_hw_inner + hw) * hw_tile
        lane = jax.lax.broadcasted_iota(jnp.int32, x.shape, dimension=2)
        x = jnp.where(hw_start + lane < HW, x, 0.0)

    psum = jnp.sum(x, axis=2, keepdims=True).sum(axis=0, keepdims=True)
    psumsq = jnp.sum(x * x, axis=2, keepdims=True).sum(axis=0, keepdims=True)

    is_first = jnp.logical_and(n == 0, hw == 0)

    @pl.when(is_first)
    def _init():
        sum_ref[...] = psum
        sumsq_ref[...] = psumsq

    @pl.when(jnp.logical_not(is_first))
    def _acc():
        sum_ref[...] += psum
        sumsq_ref[...] += psumsq


# ---------------------------------------------------------------------------
# Pass 2: y = x * scale + shift  (per-channel affine, one VPU FMA per element).
# scale/shift are tiny (C, 1) fp32 arrays precomputed in glue.
# ---------------------------------------------------------------------------
def _bn_norm_kernel(x_ref, scale_ref, shift_ref, y_ref):
    x = x_ref[...].astype(jnp.float32)              # (n_blk, c_tile, hw_tile)
    scale = scale_ref[...][None, :, :]              # (1, c_tile, 1)
    shift = shift_ref[...][None, :, :]
    y_ref[...] = (x * scale + shift).astype(y_ref.dtype)


def batchnorm2d_train(x, weight, bias, running_mean, running_var,
                      momentum=0.1, eps=1e-5):
    """Training-mode BatchNorm2d forward (spec-module semantics).

    x: (N, C, H, W).  Returns (y, new_running_mean, new_running_var).
    """
    N, C, H, W = x.shape
    HW = H * W
    M = N * HW

    x3 = x.reshape(N, C, HW)                   # free reshape, no transpose
    itemsize = jnp.dtype(x.dtype).itemsize
    n_blk, c_tile, hw_tile = _pick_tiles(N, C, HW, itemsize)

    n_c = pl.cdiv(C, c_tile)
    n_hw = pl.cdiv(HW, hw_tile)
    n_batch = N // n_blk
    mask_tail = (HW % hw_tile) != 0

    # v7x: split the HW reduction range across a leading "parallel" axis so
    # both TensorCores work on pass 1 even when there are only 1-2 channel
    # blocks.  Only enabled when the split is exact (no duplicated HBM
    # traffic), so it is harmless on single-core chips.
    use_split = (n_c <= 2) and (n_hw >= 2) and (n_hw % 2 == 0)
    n_split = 2 if use_split else 1
    n_hw_inner = n_hw // n_split

    stats_kernel = functools.partial(
        _bn_stats_kernel, HW=HW, hw_tile=hw_tile,
        n_hw_inner=n_hw_inner, mask_tail=mask_tail)

    # ---------------- pass 1: per-channel sum & sum of squares --------------
    sum_c, sumsq_c = pl.pallas_call(
        stats_kernel,
        out_shape=(
            jax.ShapeDtypeStruct((n_split, C, 1), jnp.float32),
            jax.ShapeDtypeStruct((n_split, C, 1), jnp.float32),
        ),
        grid=(n_split, n_c, n_batch, n_hw_inner),
        in_specs=[
            pl.BlockSpec((n_blk, c_tile, hw_tile),
                         lambda s, c, n, hw: (n, c, s * n_hw_inner + hw)),
        ],
        out_specs=(
            pl.BlockSpec((1, c_tile, 1), lambda s, c, n, hw: (s, c, 0)),
            pl.BlockSpec((1, c_tile, 1), lambda s, c, n, hw: (s, c, 0)),
        ),
        compiler_params=pltpu.CompilerParams(
            dimension_semantics=("parallel", "parallel", "arbitrary", "arbitrary"),
            vmem_limit_bytes=_VMEM_LIMIT_BYTES),
        cost_estimate=pl.CostEstimate(
            flops=3 * N * C * HW, transcendentals=0,
            bytes_accessed=N * C * HW * itemsize + 8 * C),
    )(x3)

    # ---------------- tiny (C,) glue: stats + per-channel affine ------------
    s = jnp.sum(sum_c, axis=0)[:, 0]
    ss = jnp.sum(sumsq_c, axis=0)[:, 0]
    mean = s / M
    var_sum = jnp.maximum(ss - s * mean, 0.0)      # = sum((x - mean)^2)
    var = var_sum / max(M - 1, 1)                  # UNBIASED, as in the spec's
                                                   # input.var(dim=(0,2,3))
    inv_std = jax.lax.rsqrt(var + eps)
    w32 = weight.astype(jnp.float32)
    b32 = bias.astype(jnp.float32)
    scale = (w32 * inv_std).reshape(C, 1)
    shift = (b32 - mean * w32 * inv_std).reshape(C, 1)

    # ---------------- pass 2: y = x * scale + shift --------------------------
    y3 = pl.pallas_call(
        _bn_norm_kernel,
        out_shape=jax.ShapeDtypeStruct((N, C, HW), x.dtype),
        grid=(n_batch, n_c, n_hw),
        in_specs=[
            pl.BlockSpec((n_blk, c_tile, hw_tile), lambda n, c, hw: (n, c, hw)),
            pl.BlockSpec((c_tile, 1), lambda n, c, hw: (c, 0)),
            pl.BlockSpec((c_tile, 1), lambda n, c, hw: (c, 0)),
        ],
        out_specs=pl.BlockSpec((n_blk, c_tile, hw_tile),
                               lambda n, c, hw: (n, c, hw)),
        compiler_params=pltpu.CompilerParams(
            dimension_semantics=("parallel", "parallel", "parallel"),
            vmem_limit_bytes=_VMEM_LIMIT_BYTES),
        cost_estimate=pl.CostEstimate(
            flops=2 * N * C * HW, transcendentals=0,
            bytes_accessed=2 * N * C * HW * itemsize + 8 * C),
    )(x3, scale, shift)

    y = y3.reshape(N, C, H, W)

    rm32 = running_mean.astype(jnp.float32)
    rv32 = running_var.astype(jnp.float32)
    new_running_mean = ((1.0 - momentum) * rm32
                        + momentum * mean).astype(running_mean.dtype)
    new_running_var = ((1.0 - momentum) * rv32
                       + momentum * var).astype(running_var.dtype)
    return y, new_running_mean, new_running_var


def _reference(x, weight, bias, eps):
    """Pure-JAX mirror of the spec module's training forward."""
    mean = jnp.mean(x, axis=(0, 2, 3))
    M = x.shape[0] * x.shape[2] * x.shape[3]
    diff = x - mean.reshape(1, -1, 1, 1)
    var = jnp.sum(diff * diff, axis=(0, 2, 3)) / (M - 1)   # unbiased
    norm = diff / jnp.sqrt(var.reshape(1, -1, 1, 1) + eps)
    y = norm * weight.reshape(1, -1, 1, 1) + bias.reshape(1, -1, 1, 1)
    return y, mean, var


if __name__ == "__main__":
    key = jax.random.PRNGKey(0)
    N, C, H, W = 2, 4, 16, 16

    x = jax.random.normal(key, (N, C, H, W), dtype=jnp.float32) * 2.0 + 0.5

    # Deterministic parameter init, mirroring the module's __init__:
    weight = jnp.ones((C,), dtype=jnp.float32)        # init.ones_
    bias = jnp.zeros((C,), dtype=jnp.float32)         # init.zeros_
    running_mean = jnp.zeros((C,), dtype=jnp.float32)
    running_var = jnp.ones((C,), dtype=jnp.float32)
    momentum, eps = 0.1, 1e-5

    y, rm, rv = batchnorm2d_train(x, weight, bias, running_mean, running_var,
                                  momentum=momentum, eps=eps)
    jax.block_until_ready((y, rm, rv))

    # Sanity check against a pure-JAX reference of the spec module's math.
    y_ref, mean_ref, var_ref = _reference(x, weight, bias, eps)
    rm_ref = (1 - momentum) * running_mean + momentum * mean_ref
    rv_ref = (1 - momentum) * running_var + momentum * var_ref
    assert jnp.allclose(y, y_ref, atol=1e-4, rtol=1e-4)
    assert jnp.allclose(rm, rm_ref, atol=1e-4, rtol=1e-4)
    assert jnp.allclose(rv, rv_ref, atol=1e-4, rtol=1e-4)

    print("KERNEL_OK")
</pallas_src>

<mosaic_0001>
module attributes {stable_mosaic.version = 11 : i64} {
  func.func @_bn_stats_kernel(%arg0: i32, %arg1: i32, %arg2: i32, %arg3: i32, %arg4: memref<2x4x256xf32, #tpu.memory_space<vmem>>, %arg5: memref<1x4x1xf32, #tpu.memory_space<vmem>>, %arg6: memref<1x4x1xf32, #tpu.memory_space<vmem>>) attributes {dimension_semantics = [#tpu.dimension_semantics<parallel>, #tpu.dimension_semantics<parallel>, #tpu.dimension_semantics<arbitrary>, #tpu.dimension_semantics<arbitrary>], iteration_bounds = array<i64: 1, 1, 1, 1>, scalar_prefetch = 0 : i64, scratch_operands = 0 : i64, tpu.core_type = #tpu.core_type<tc>, window_params = [{transform_indices = @transform_0, window_bounds = array<i64: 2, 4, 256>}, {transform_indices = @transform_1, window_bounds = array<i64: 1, 4, 1>}, {transform_indices = @transform_2, window_bounds = array<i64: 1, 4, 1>}]} {
    %c0 = arith.constant 0 : index
    %c0_0 = arith.constant 0 : index
    %c0_1 = arith.constant 0 : index
    %0 = vector.load %arg4[%c0, %c0_0, %c0_1] : memref<2x4x256xf32, #tpu.memory_space<vmem>>, vector<2x4x256xf32>
    %cst = arith.constant dense<0.000000e+00> : vector<2x4xf32>
    %1 = vector.multi_reduction <add>, %0, %cst [2] : vector<2x4x256xf32> to vector<2x4xf32>
    %2 = vector.shape_cast %1 : vector<2x4xf32> to vector<2x4x1xf32>
    %cst_2 = arith.constant dense<0.000000e+00> : vector<4x1xf32>
    %3 = vector.multi_reduction <add>, %2, %cst_2 [0] : vector<2x4x1xf32> to vector<4x1xf32>
    %4 = vector.shape_cast %3 : vector<4x1xf32> to vector<1x4x1xf32>
    %5 = arith.mulf %0, %0 : vector<2x4x256xf32>
    %cst_3 = arith.constant dense<0.000000e+00> : vector<2x4xf32>
    %6 = vector.multi_reduction <add>, %5, %cst_3 [2] : vector<2x4x256xf32> to vector<2x4xf32>
    %7 = vector.shape_cast %6 : vector<2x4xf32> to vector<2x4x1xf32>
    %cst_4 = arith.constant dense<0.000000e+00> : vector<4x1xf32>
    %8 = vector.multi_reduction <add>, %7, %cst_4 [0] : vector<2x4x1xf32> to vector<4x1xf32>
    %9 = vector.shape_cast %8 : vector<4x1xf32> to vector<1x4x1xf32>
    %c0_i32 = arith.constant 0 : i32
    %10 = arith.cmpi eq, %arg2, %c0_i32 : i32
    %c0_i32_5 = arith.constant 0 : i32
    %11 = arith.cmpi eq, %arg3, %c0_i32_5 : i32
    %12 = arith.andi %10, %11 : i1
    %13 = arith.extui %12 : i1 to i32
    %c0_i32_6 = arith.constant 0 : i32
    %14 = arith.cmpi ne, %13, %c0_i32_6 : i32
    scf.if %14 {
      %c0_8 = arith.constant 0 : index
      %c0_9 = arith.constant 0 : index
      %c0_10 = arith.constant 0 : index
      %18 = vector.load %arg5[%c0_8, %c0_9, %c0_10] : memref<1x4x1xf32, #tpu.memory_space<vmem>>, vector<1x4x1xf32>
      tpu.vector_store %arg5[%c0_8, %c0_9, %c0_10], %4 {strides = array<i32>} : memref<1x4x1xf32, #tpu.memory_space<vmem>>, vector<1x4x1xf32>,
      %c0_11 = arith.constant 0 : index
      %c0_12 = arith.constant 0 : index
      %c0_13 = arith.constant 0 : index
      %19 = vector.load %arg6[%c0_11, %c0_12, %c0_13] : memref<1x4x1xf32, #tpu.memory_space<vmem>>, vector<1x4x1xf32>
      tpu.vector_store %arg6[%c0_11, %c0_12, %c0_13], %9 {strides = array<i32>} : memref<1x4x1xf32, #tpu.memory_space<vmem>>, vector<1x4x1xf32>,
    } else {
    }
    %true = arith.constant true
    %15 = arith.xori %12, %true : i1
    %16 = arith.extui %15 : i1 to i32
    %c0_i32_7 = arith.constant 0 : i32
    %17 = arith.cmpi ne, %16, %c0_i32_7 : i32
    scf.if %17 {
      %c0_8 = arith.constant 0 : index
      %c0_9 = arith.constant 0 : index
      %c0_10 = arith.constant 0 : index
      %18 = vector.load %arg5[%c0_8, %c0_9, %c0_10] : memref<1x4x1xf32, #tpu.memory_space<vmem>>, vector<1x4x1xf32>
      %19 = arith.addf %18, %4 : vector<1x4x1xf32>
      %c0_11 = arith.constant 0 : index
      %c0_12 = arith.constant 0 : index
      %c0_13 = arith.constant 0 : index
      %20 = vector.load %arg5[%c0_11, %c0_12, %c0_13] : memref<1x4x1xf32, #tpu.memory_space<vmem>>, vector<1x4x1xf32>
      tpu.vector_store %arg5[%c0_11, %c0_12, %c0_13], %19 {strides = array<i32>} : memref<1x4x1xf32, #tpu.memory_space<vmem>>, vector<1x4x1xf32>,
      %c0_14 = arith.constant 0 : index
      %c0_15 = arith.constant 0 : index
      %c0_16 = arith.constant 0 : index
      %21 = vector.load %arg6[%c0_14, %c0_15, %c0_16] : memref<1x4x1xf32, #tpu.memory_space<vmem>>, vector<1x4x1xf32>
      %22 = arith.addf %21, %9 : vector<1x4x1xf32>
      %c0_17 = arith.constant 0 : index
      %c0_18 = arith.constant 0 : index
      %c0_19 = arith.constant 0 : index
      %23 = vector.load %arg6[%c0_17, %c0_18, %c0_19] : memref<1x4x1xf32, #tpu.memory_space<vmem>>, vector<1x4x1xf32>
      tpu.vector_store %arg6[%c0_17, %c0_18, %c0_19], %22 {strides = array<i32>} : memref<1x4x1xf32, #tpu.memory_space<vmem>>, vector<1x4x1xf32>,
    } else {
    }
    return
  }
  func.func @transform_0(%arg0: i32, %arg1: i32, %arg2: i32, %arg3: i32) -> (i32, i32, i32) {
    %c1_i32 = arith.constant 1 : i32
    %0 = arith.muli %arg0, %c1_i32 : i32
    %1 = arith.addi %0, %arg3 : i32
    %c0_i32 = arith.constant 0 : i32
    return %arg2, %arg1, %1 : i32, i32, i32
  }
  func.func @transform_1(%arg0: i32, %arg1: i32, %arg2: i32, %arg3: i32) -> (i32, i32, i32) {
    %c0_i32 = arith.constant 0 : i32
    %c0_i32_0 = arith.constant 0 : i32
    return %arg0, %arg1, %c0_i32 : i32, i32, i32
  }
  func.func @transform_2(%arg0: i32, %arg1: i32, %arg2: i32, %arg3: i32) -> (i32, i32, i32) {
    %c0_i32 = arith.constant 0 : i32
    %c0_i32_0 = arith.constant 0 : i32
    return %arg0, %arg1, %c0_i32 : i32, i32, i32
  }
}

</mosaic_0001>

<bundles_post_ra>
// kernel: tpu_custom_call.1
= control target key start
LH: loop header
LB: loop body
LE: loop exit
PB: predicated region body
PF: predicated region fallthrough
CT: control target
= control target key end

     0   :  { %8 = vsyncpa [#allocation3], 0  ;;  %s130_s9 = smov [#allocation2]   ;;  %s178_s0 = inlined_call_operand.hbm [shape: f32[2,4,256], index: 0, kind: input, shape index: {}]   ;;  %s179_s1 = inlined_call_operand.vmem [shape: f32[1,4,1], index: 1, kind: output, shape index: {0}]   ;;  %s180_s2 = inlined_call_operand.vmem [shape: f32[1,4,1], index: 2, kind: output, shape index: {1}]  }
   0x1   :  { %s18_s10 = sshll.u32 %s130_s9, 4  ;;  %s106_s13 = scalar_lea.hbm %s178_s0, 256  ;;  %s19_s10 = int_to_ptr.vmem [resolvable:$true] %s18_s10 }
   0x2   :  { %p107_p0 = scmp.ne.s32.totalorder %s178_s0, %s106_s13  ;;  %p110_p1 = scmp.lt.u32.totalorder %s106_s13, %s178_s0 }
   0x4   :  { %p112_p2 = pnand %p110_p1, %p107_p0 }
   0x6   :  { %115 = shalt.err (!%p112_p2)
}
   0x7   :  { %s116_s18 = scalar_lea.vmem %s19_s10, 256  ;;  %p121_p4 = scmp.lt.s32.totalorder %s19_s10, %s19_s10 }
   0x8   :  { %p117_p3 = scmp.ne.s32.totalorder %s19_s10, %s116_s18  ;;  %p122_p5 = scmp.lt.s32.totalorder %s116_s18, %s116_s18 }
   0xa   :  { %p123_p6 = por %p122_p5, %p121_p4 }
   0xc   :  { %p124_p7 = pnand %p123_p6, %p117_p3 }
   0xe   :  { %127 = shalt.err (!%p124_p7)
}
   0xf   :  { %s131_s19 = smov 128   ;;  %s132_s20 = smov 8  }
  0x10   :  { %24 = dma.hbm_to_vmem [thread:$0]  %s178_s0, 256, %s19_s10, [#allocation3], %s131_s19, %s131_s19, %s132_s20  }
  0x11   :  { %128 = dma.done.wait [#allocation3], 256  }
  0x12   :  { %129 = vsyncadd [#allocation3], 4294967040  ;;  %vm38_vm0 = vcmask 1043456   ;;  %v30_v0 = vld [vmem:[#allocation2] sm:$0xff]  ;;  %v31_v1 = vld [vmem:[#allocation2 + $0x8] sm:$0xff]  ;;  %vm79_vm1 = vcmask 3072  }
  0x13   :  { %v34_v2 = vcombine.high %v30_v0, %v30_v0  ;;  %v39_v3 = vsel %vm38_vm0, %v30_v0, 0.0  ;;  %v52_v4 = vmul.f32 %v30_v0, %v30_v0  ;;  %v35_v5 = vcombine.high %v31_v1, %v31_v1 }
  0x14   :  { %v44_v6 = vsel %vm38_vm0, %v31_v1, 0.0  ;;  %v53_v7 = vmul.f32 %v31_v1, %v31_v1 }
  0x15   :  { %v40_v8 = vsel %vm38_vm0, %v34_v2, 0.0  ;;  %v56_v9 = vcombine.high %v52_v4, %v52_v4  ;;  %v60_v10 = vsel %vm38_vm0, %v52_v4, 0.0  ;;  %v45_v11 = vsel %vm38_vm0, %v35_v5, 0.0 }
  0x16   :  { %v41_v12 = vadd.f32 %v40_v8, %v39_v3  ;;  %v57_v13 = vcombine.high %v53_v7, %v53_v7  ;;  %v65_v15 = vsel %vm38_vm0, %v53_v7, 0.0  ;;  %v46_v17 = vadd.f32 %v45_v11, %v44_v6 }
  0x17   :  { %v61_v14 = vsel %vm38_vm0, %v56_v9, 0.0 }
  0x18   :  { %42 = vadd.xlane.f32.xlu0 %v41_v12  ;;  %v62_v16 = vadd.f32 %v61_v14, %v60_v10  ;;  %v66_v18 = vsel %vm38_vm0, %v57_v13, 0.0 }
  0x19   :  { %v67_v19 = vadd.f32 %v66_v18, %v65_v15 }
  0x1a   :  { %63 = vadd.xlane.f32.xlu1 %v62_v16 }
  0x1c   :  { %47 = vadd.xlane.f32.xlu0 %v46_v17 }
  0x1e   :  { %68 = vadd.xlane.f32.xlu1 %v67_v19 }
  0xa5   :  { %v43_v20 = vpop.xlane.xlu0 %42 }
  0xa6   :  { %v49_v23 = vsel %vm38_vm0, %v43_v20, 0.0 }
  0xa7   :  { %v64_v21 = vpop.xlane.xlu1 %63 }
  0xa8   :  { %v70_v27 = vsel %vm38_vm0, %v64_v21, 0.0 }
  0xa9   :  { %v48_v22 = vpop.xlane.xlu0 %47 }
  0xaa   :  { %v50_v24 = vsel %vm38_vm0, %v48_v22, 0.0 }
  0xab   :  { %v51_v25 = vadd.f32 %v50_v24, %v49_v23  ;;  %v69_v26 = vpop.xlane.xlu1 %68 }
  0xac   :  { %v71_v28 = vsel %vm38_vm0, %v69_v26, 0.0 }
  0xad   :  { %80 = vst.msk [vmem:[%s179_s1] sm:$0xf] %vm79_vm1, %v51_v25  ;;  %v72_v29 = vadd.f32 %v71_v28, %v70_v27 }
  0xaf   :  { %81 = vst.msk [vmem:[%s180_s2] sm:$0xf] %vm79_vm1, %v72_v29 }
  0xb0   :  { %100 = vsyncpa [#allocation3], 1 }

</bundles_post_ra>
